<compile_context>
chip_gen: v7x
topology: tpu7x:2x2x1
jax: 0.10.0
libtpu: 0.0.40
codegen_flags: <defaults>
</compile_context>

<pallas_src>
import functools
import math

import jax
import jax.numpy as jnp
from jax.experimental import pallas as pl
from jax.experimental.pallas import tpu as pltpu


def _round_up(x, m):
    return ((x + m - 1) // m) * m


def _lmn_kernel(m_ref, x_ref, wmh_ref, wxh_ref, wmm_ref, whm_ref,
                bh_ref, bm_ref, out_ref):
    """One batch tile of the LMN cell.

    m_ref  : (TB, mem)         previous memory (caller dtype)
    x_ref  : (TB, in)          input           (caller dtype)
    wmh_ref: (mem, hp)         Wmh^T  (compute dtype, hidden padded to hp)
    wxh_ref: (in,  hp)         Wxh^T
    wmm_ref: (mem, mem)        Wmm^T
    whm_ref: (hp,  mem)        Whm^T  (padded rows are zero)
    bh_ref : (1, hp)   f32     (padded entries are zero)
    bm_ref : (1, mem)  f32
    out_ref: (TB, mem)         out dtype
    """
    cd = wmh_ref.dtype                      # compute (MXU) dtype
    m = m_ref[...].astype(cd)
    x = x_ref[...].astype(cd)

    # Stage 1: h = tanh(m @ Wmh^T + x @ Wxh^T + bh)   — two accumulating dots,
    # f32 accumulation; bias add + tanh stay in f32 (EUP path).
    h32 = jnp.dot(m, wmh_ref[...], preferred_element_type=jnp.float32)
    h32 = h32 + jnp.dot(x, wxh_ref[...], preferred_element_type=jnp.float32)
    h32 = jnp.tanh(h32 + bh_ref[...])
    h = h32.astype(cd)

    # Stage 2: m_new = m @ Wmm^T + h @ Whm^T + bm     — two accumulating dots.
    o32 = jnp.dot(m, wmm_ref[...], preferred_element_type=jnp.float32)
    o32 = o32 + jnp.dot(h, whm_ref[...], preferred_element_type=jnp.float32)
    out_ref[...] = (o32 + bm_ref[...]).astype(out_ref.dtype)


def prepare_lmn_weights(Wxh, Wmh, Whm, Wmm, bh, bm, *,
                        compute_dtype=jnp.bfloat16):
    """One-time weight prep (call at parameter load, NOT per timestep).

    Transposes to [K, N] MXU layout, zero-pads the hidden dim up to a multiple
    of 128 (mathematically exact), and casts to the compute dtype.
    """
    hidden_size, in_size = Wxh.shape
    memory_size = Wmm.shape[0]
    hp = _round_up(hidden_size, 128)
    pad_h = hp - hidden_size

    wxh_t = Wxh.T.astype(compute_dtype)            # (in,  hidden)
    wmh_t = Wmh.T.astype(compute_dtype)            # (mem, hidden)
    whm_t = Whm.T.astype(compute_dtype)            # (hidden, mem)
    wmm_t = Wmm.T.astype(compute_dtype)            # (mem, mem)
    bh2 = bh.reshape(1, hidden_size).astype(jnp.float32)
    bm2 = bm.reshape(1, memory_size).astype(jnp.float32)

    if pad_h:
        wxh_t = jnp.pad(wxh_t, ((0, 0), (0, pad_h)))   # zero output cols
        wmh_t = jnp.pad(wmh_t, ((0, 0), (0, pad_h)))
        bh2 = jnp.pad(bh2, ((0, 0), (0, pad_h)))       # zero bias -> h_pad = 0
        whm_t = jnp.pad(whm_t, ((0, pad_h), (0, 0)))   # zero rows -> exact

    return {"wmh_t": wmh_t, "wxh_t": wxh_t, "wmm_t": wmm_t, "whm_t": whm_t,
            "bh": bh2, "bm": bm2}


def lmn_detach_cell(x_prev, m_prev, params, *, tile_b=512,
                    out_dtype=jnp.float32):
    """Pallas forward of LMNDetachCell using pre-prepared weights.

    Returns (m_curr, m_curr).  Output kept f32 by default so the carried
    memory state stays full precision across timesteps.
    """
    B, in_size = x_prev.shape
    memory_size = m_prev.shape[1]
    hp = params["wmh_t"].shape[1]
    assert m_prev.shape == (B, memory_size)
    assert params["wxh_t"].shape[0] == in_size
    assert params["wmm_t"].shape == (memory_size, memory_size)

    # Batch tile: big enough to amortize per-step overhead, but split into at
    # least 2 grid steps when possible so both v7x TensorCores get work.
    half = -(-B // 2)
    TB = max(8, min(tile_b, _round_up(half, 8)))
    grid = (pl.cdiv(B, TB),)                   # ragged last block handled by Pallas

    flops = 2 * B * (memory_size * hp + in_size * hp
                     + memory_size * memory_size + hp * memory_size)
    bytes_accessed = (
        m_prev.size * m_prev.dtype.itemsize
        + x_prev.size * x_prev.dtype.itemsize
        + sum(v.size * v.dtype.itemsize for v in params.values())
        + B * memory_size * jnp.dtype(out_dtype).itemsize
    )
    cost = pl.CostEstimate(flops=flops, transcendentals=B * hp,
                           bytes_accessed=bytes_accessed)

    m_curr = pl.pallas_call(
        _lmn_kernel,
        out_shape=jax.ShapeDtypeStruct((B, memory_size), out_dtype),
        grid=grid,
        in_specs=[
            pl.BlockSpec((TB, memory_size), lambda i: (i, 0)),   # m: batch-tiled
            pl.BlockSpec((TB, in_size), lambda i: (i, 0)),       # x: batch-tiled
            pl.BlockSpec((memory_size, hp), lambda i: (0, 0)),   # Wmh^T: resident
            pl.BlockSpec((in_size, hp), lambda i: (0, 0)),       # Wxh^T: resident
            pl.BlockSpec((memory_size, memory_size), lambda i: (0, 0)),  # Wmm^T
            pl.BlockSpec((hp, memory_size), lambda i: (0, 0)),   # Whm^T: resident
            pl.BlockSpec((1, hp), lambda i: (0, 0)),             # bh
            pl.BlockSpec((1, memory_size), lambda i: (0, 0)),    # bm
        ],
        out_specs=pl.BlockSpec((TB, memory_size), lambda i: (i, 0)),
        compiler_params=pltpu.CompilerParams(
            dimension_semantics=("parallel",)),
        cost_estimate=cost,
    )(m_prev, x_prev, params["wmh_t"], params["wxh_t"],
      params["wmm_t"], params["whm_t"], params["bh"], params["bm"])

    return m_curr, m_curr


def _xavier_normal(key, out_f, in_f, gain=0.9):
    std = gain * math.sqrt(2.0 / (in_f + out_f))
    return std * jax.random.normal(key, (out_f, in_f), dtype=jnp.float32)


if __name__ == "__main__":
    # Small shapes consistent with the module's forward.
    batch = 8
    in_size = 32
    hidden_size = 64
    memory_size = 128

    key = jax.random.PRNGKey(0)
    keys = jax.random.split(key, 8)

    # Deterministic parameter init (matches __init__ shapes; xavier_normal
    # gain=0.9 for 2-D params, randn for biases).
    Wxh = _xavier_normal(keys[0], hidden_size, in_size)
    Whm = _xavier_normal(keys[1], memory_size, hidden_size)
    Wmm = _xavier_normal(keys[2], memory_size, memory_size)
    Wmh = _xavier_normal(keys[3], hidden_size, memory_size)
    bh = jax.random.normal(keys[4], (hidden_size,), dtype=jnp.float32)
    bm = jax.random.normal(keys[5], (memory_size,), dtype=jnp.float32)

    x_prev = jax.random.normal(keys[6], (batch, in_size), dtype=jnp.float32)
    m_prev = jax.random.normal(keys[7], (batch, memory_size), dtype=jnp.float32)

    # Pure-JAX reference (forward values are independent of p_detach).
    h_ref = jnp.tanh(x_prev @ Wxh.T + m_prev @ Wmh.T + bh)
    m_ref = h_ref @ Whm.T + m_prev @ Wmm.T + bm

    cell = jax.jit(lmn_detach_cell)

    # bf16 MXU path (default; f32 accumulation) — looser tolerance.
    params_bf16 = prepare_lmn_weights(Wxh, Wmh, Whm, Wmm, bh, bm)
    m_bf16, m_bf16_b = cell(x_prev, m_prev, params_bf16)
    jax.block_until_ready(m_bf16)
    assert m_bf16.shape == (batch, memory_size)
    assert jnp.array_equal(m_bf16, m_bf16_b)
    assert jnp.allclose(m_bf16, m_ref, atol=5e-2, rtol=5e-2)

    # f32 MXU path — tight check.
    params_f32 = prepare_lmn_weights(Wxh, Wmh, Whm, Wmm, bh, bm,
                                     compute_dtype=jnp.float32)
    m_f32, _ = cell(x_prev, m_prev, params_f32)
    jax.block_until_ready(m_f32)
    assert jnp.allclose(m_f32, m_ref, atol=1e-4, rtol=1e-4)

    print("KERNEL_OK")
</pallas_src>

<mosaic_0001>
module attributes {stable_mosaic.version = 11 : i64} {
  func.func @_lmn_kernel(%arg0: i32, %arg1: memref<8x128xf32, #tpu.memory_space<vmem>>, %arg2: memref<8x32xf32, #tpu.memory_space<vmem>>, %arg3: memref<128x128xbf16, #tpu.memory_space<vmem>>, %arg4: memref<32x128xbf16, #tpu.memory_space<vmem>>, %arg5: memref<128x128xbf16, #tpu.memory_space<vmem>>, %arg6: memref<128x128xbf16, #tpu.memory_space<vmem>>, %arg7: memref<1x128xf32, #tpu.memory_space<vmem>>, %arg8: memref<1x128xf32, #tpu.memory_space<vmem>>, %arg9: memref<8x128xf32, #tpu.memory_space<vmem>>) attributes {dimension_semantics = [#tpu.dimension_semantics<parallel>], iteration_bounds = array<i64: 1>, scalar_prefetch = 0 : i64, scratch_operands = 0 : i64, tpu.core_type = #tpu.core_type<tc>, window_params = [{transform_indices = @transform_0, window_bounds = array<i64: 8, 128>}, {transform_indices = @transform_1, window_bounds = array<i64: 8, 32>}, {pipeline_mode = #tpu.pipeline_mode<synchronous>, transform_indices = @transform_2, window_bounds = array<i64: 128, 128>}, {pipeline_mode = #tpu.pipeline_mode<synchronous>, transform_indices = @transform_3, window_bounds = array<i64: 32, 128>}, {pipeline_mode = #tpu.pipeline_mode<synchronous>, transform_indices = @transform_4, window_bounds = array<i64: 128, 128>}, {pipeline_mode = #tpu.pipeline_mode<synchronous>, transform_indices = @transform_5, window_bounds = array<i64: 128, 128>}, {pipeline_mode = #tpu.pipeline_mode<synchronous>, transform_indices = @transform_6, window_bounds = array<i64: 1, 128>}, {pipeline_mode = #tpu.pipeline_mode<synchronous>, transform_indices = @transform_7, window_bounds = array<i64: 1, 128>}, {transform_indices = @transform_8, window_bounds = array<i64: 8, 128>}]} {
    %c0 = arith.constant 0 : index
    %c0_0 = arith.constant 0 : index
    %0 = vector.load %arg1[%c0, %c0_0] : memref<8x128xf32, #tpu.memory_space<vmem>>, vector<8x128xf32>
    %1 = arith.truncf %0 : vector<8x128xf32> to vector<8x128xbf16>
    %c0_1 = arith.constant 0 : index
    %c0_2 = arith.constant 0 : index
    %2 = vector.load %arg2[%c0_1, %c0_2] : memref<8x32xf32, #tpu.memory_space<vmem>>, vector<8x32xf32>
    %3 = arith.truncf %2 : vector<8x32xf32> to vector<8x32xbf16>
    %c0_3 = arith.constant 0 : index
    %c0_4 = arith.constant 0 : index
    %4 = vector.load %arg3[%c0_3, %c0_4] : memref<128x128xbf16, #tpu.memory_space<vmem>>, vector<128x128xbf16>
    %cst = arith.constant dense<0.000000e+00> : vector<8x128xf32>
    %5 = tpu.matmul %1, %4, %cst {dimension_numbers = #tpu.dot_dimension_numbers<[1], [0], [0], [1], [0, 0, 1, 1], [], []>} : vector<8x128xbf16>, vector<128x128xbf16>, vector<8x128xf32> -> vector<8x128xf32>
    %c0_5 = arith.constant 0 : index
    %c0_6 = arith.constant 0 : index
    %6 = vector.load %arg4[%c0_5, %c0_6] : memref<32x128xbf16, #tpu.memory_space<vmem>>, vector<32x128xbf16>
    %cst_7 = arith.constant dense<0.000000e+00> : vector<8x128xf32>
    %7 = tpu.matmul %3, %6, %cst_7 {dimension_numbers = #tpu.dot_dimension_numbers<[1], [0], [0], [1], [0, 0, 1, 1], [], []>} : vector<8x32xbf16>, vector<32x128xbf16>, vector<8x128xf32> -> vector<8x128xf32>
    %8 = arith.addf %5, %7 : vector<8x128xf32>
    %c0_8 = arith.constant 0 : index
    %c0_9 = arith.constant 0 : index
    %9 = vector.load %arg7[%c0_8, %c0_9] : memref<1x128xf32, #tpu.memory_space<vmem>>, vector<1x128xf32>
    %10 = vector.broadcast %9 : vector<1x128xf32> to vector<8x128xf32>
    %11 = arith.addf %8, %10 : vector<8x128xf32>
    %12 = math.tanh %11 : vector<8x128xf32>
    %13 = arith.truncf %12 : vector<8x128xf32> to vector<8x128xbf16>
    %c0_10 = arith.constant 0 : index
    %c0_11 = arith.constant 0 : index
    %14 = vector.load %arg5[%c0_10, %c0_11] : memref<128x128xbf16, #tpu.memory_space<vmem>>, vector<128x128xbf16>
    %cst_12 = arith.constant dense<0.000000e+00> : vector<8x128xf32>
    %15 = tpu.matmul %1, %14, %cst_12 {dimension_numbers = #tpu.dot_dimension_numbers<[1], [0], [0], [1], [0, 0, 1, 1], [], []>} : vector<8x128xbf16>, vector<128x128xbf16>, vector<8x128xf32> -> vector<8x128xf32>
    %c0_13 = arith.constant 0 : index
    %c0_14 = arith.constant 0 : index
    %16 = vector.load %arg6[%c0_13, %c0_14] : memref<128x128xbf16, #tpu.memory_space<vmem>>, vector<128x128xbf16>
    %cst_15 = arith.constant dense<0.000000e+00> : vector<8x128xf32>
    %17 = tpu.matmul %13, %16, %cst_15 {dimension_numbers = #tpu.dot_dimension_numbers<[1], [0], [0], [1], [0, 0, 1, 1], [], []>} : vector<8x128xbf16>, vector<128x128xbf16>, vector<8x128xf32> -> vector<8x128xf32>
    %18 = arith.addf %15, %17 : vector<8x128xf32>
    %c0_16 = arith.constant 0 : index
    %c0_17 = arith.constant 0 : index
    %19 = vector.load %arg8[%c0_16, %c0_17] : memref<1x128xf32, #tpu.memory_space<vmem>>, vector<1x128xf32>
    %20 = vector.broadcast %19 : vector<1x128xf32> to vector<8x128xf32>
    %21 = arith.addf %18, %20 : vector<8x128xf32>
    %c0_18 = arith.constant 0 : index
    %c0_19 = arith.constant 0 : index
    %22 = vector.load %arg9[%c0_18, %c0_19] : memref<8x128xf32, #tpu.memory_space<vmem>>, vector<8x128xf32>
    tpu.vector_store %arg9[%c0_18, %c0_19], %21 {strides = array<i32>} : memref<8x128xf32, #tpu.memory_space<vmem>>, vector<8x128xf32>,
    return
  }
  func.func @transform_0(%arg0: i32) -> (i32, i32) {
    %c0_i32 = arith.constant 0 : i32
    %c0_i32_0 = arith.constant 0 : i32
    return %arg0, %c0_i32 : i32, i32
  }
  func.func @transform_1(%arg0: i32) -> (i32, i32) {
    %c0_i32 = arith.constant 0 : i32
    %c0_i32_0 = arith.constant 0 : i32
    return %arg0, %c0_i32 : i32, i32
  }
  func.func @transform_2(%arg0: i32) -> (i32, i32) {
    %c0_i32 = arith.constant 0 : i32
    %c0_i32_0 = arith.constant 0 : i32
    %c0_i32_1 = arith.constant 0 : i32
    return %c0_i32, %c0_i32_0 : i32, i32
  }
  func.func @transform_3(%arg0: i32) -> (i32, i32) {
    %c0_i32 = arith.constant 0 : i32
    %c0_i32_0 = arith.constant 0 : i32
    %c0_i32_1 = arith.constant 0 : i32
    return %c0_i32, %c0_i32_0 : i32, i32
  }
  func.func @transform_4(%arg0: i32) -> (i32, i32) {
    %c0_i32 = arith.constant 0 : i32
    %c0_i32_0 = arith.constant 0 : i32
    %c0_i32_1 = arith.constant 0 : i32
    return %c0_i32, %c0_i32_0 : i32, i32
  }
  func.func @transform_5(%arg0: i32) -> (i32, i32) {
    %c0_i32 = arith.constant 0 : i32
    %c0_i32_0 = arith.constant 0 : i32
    %c0_i32_1 = arith.constant 0 : i32
    return %c0_i32, %c0_i32_0 : i32, i32
  }
  func.func @transform_6(%arg0: i32) -> (i32, i32) {
    %c0_i32 = arith.constant 0 : i32
    %c0_i32_0 = arith.constant 0 : i32
    %c0_i32_1 = arith.constant 0 : i32
    return %c0_i32, %c0_i32_0 : i32, i32
  }
  func.func @transform_7(%arg0: i32) -> (i32, i32) {
    %c0_i32 = arith.constant 0 : i32
    %c0_i32_0 = arith.constant 0 : i32
    %c0_i32_1 = arith.constant 0 : i32
    return %c0_i32, %c0_i32_0 : i32, i32
  }
  func.func @transform_8(%arg0: i32) -> (i32, i32) {
    %c0_i32 = arith.constant 0 : i32
    %c0_i32_0 = arith.constant 0 : i32
    return %arg0, %c0_i32 : i32, i32
  }
}

</mosaic_0001>

<bundles_post_ra>
// kernel: lmn_detach_cell.1
= control target key start
LH: loop header
LB: loop body
LE: loop exit
PB: predicated region body
PF: predicated region fallthrough
CT: control target
= control target key end

     0   :  { %13 = vsyncpa [#allocation3], 0  ;;  %s948_s0 = inlined_call_operand.hbm [shape: f32[8,128], index: 0, kind: input, shape index: {}]   ;;  %s949_s1 = inlined_call_operand.hbm [shape: f32[8,32], index: 1, kind: input, shape index: {}]   ;;  %s950_s2 = inlined_call_operand.hbm [shape: bf16[128,128], index: 2, kind: input, shape index: {}]   ;;  %s951_s3 = inlined_call_operand.vmem [shape: bf16[32,128], index: 3, kind: input, shape index: {}]   ;;  %s952_s4 = inlined_call_operand.hbm [shape: bf16[128,128], index: 4, kind: input, shape index: {}]   ;;  %s953_s5 = inlined_call_operand.hbm [shape: bf16[128,128], index: 5, kind: input, shape index: {}]   ;;  %s954_s6 = inlined_call_operand.vmem [shape: f32[1,128], index: 6, kind: input, shape index: {}]   ;;  %s955_s7 = inlined_call_operand.vmem [shape: f32[1,128], index: 7, kind: input, shape index: {}]   ;;  %s956_s8 = inlined_call_operand.vmem [shape: f32[8,128], index: 8, kind: output, shape index: {}]  }
   0x1   :  { %14 = vsyncpa [#allocation5], 0 }
   0x2   :  { %15 = vsyncpa [#allocation8], 0  ;;  %s776_s27 = smov [#allocation4]   ;;  %s660_s9 = scalar_lea.hbm %s949_s1, 128 }
   0x3   :  { %s32_s28 = sshll.u32 %s776_s27, 4  ;;  %p661_p0 = scmp.ne.s32.totalorder %s949_s1, %s660_s9  ;;  %s33_s28 = int_to_ptr.vmem [resolvable:$true] %s32_s28 }
   0x4   :  { %p664_p1 = scmp.lt.u32.totalorder %s660_s9, %s949_s1 }
   0x6   :  { %p666_p2 = pnand %p664_p1, %p661_p0 }
   0x8   :  { %669 = shalt.err (!%p666_p2)
}
   0x9   :  { %s670_s14 = scalar_lea.vmem %s33_s28, 128  ;;  %p675_p4 = scmp.lt.s32.totalorder %s33_s28, %s33_s28 }
   0xa   :  { %p671_p3 = scmp.ne.s32.totalorder %s33_s28, %s670_s14  ;;  %p676_p5 = scmp.lt.s32.totalorder %s670_s14, %s670_s14 }
   0xc   :  { %p677_p6 = por %p676_p5, %p675_p4 }
   0xe   :  { %p678_p7 = pnand %p677_p6, %p671_p3 }
  0x10   :  { %681 = shalt.err (!%p678_p7)
}
  0x11   :  { %35 = dma.hbm_to_vmem [thread:$0]  %s949_s1, 128, %s33_s28, [#allocation5]  }
  0x12   :  { %s777_s17 = smov [#allocation7]   ;;  %s778_s19 = smov [#allocation2]  }
  0x13   :  { %s55_s18 = sshll.u32 %s777_s17, 4  ;;  %s22_s20 = sshll.u32 %s778_s19, 4  ;;  %s56_s18 = int_to_ptr.vmem [resolvable:$true] %s55_s18  ;;  %s23_s20 = int_to_ptr.vmem [resolvable:$true] %s22_s20 }
  0x14   :  { %s682_s23 = scalar_lea.hbm %s952_s4, 1024 }
  0x15   :  { %p683_p8 = scmp.ne.s32.totalorder %s952_s4, %s682_s23  ;;  %p686_p9 = scmp.lt.u32.totalorder %s682_s23, %s952_s4 }
  0x17   :  { %p688_p10 = pnand %p686_p9, %p683_p8 }
  0x19   :  { %691 = shalt.err (!%p688_p10)
}
  0x1a   :  { %s692_s1 = scalar_lea.vmem %s56_s18, 1024  ;;  %p697_p12 = scmp.lt.s32.totalorder %s56_s18, %s56_s18 }
  0x1b   :  { %p693_p11 = scmp.ne.s32.totalorder %s56_s18, %s692_s1  ;;  %p698_p13 = scmp.lt.s32.totalorder %s692_s1, %s692_s1 }
  0x1d   :  { %p699_p0 = por %p698_p13, %p697_p12 }
  0x1f   :  { %p700_p1 = pnand %p699_p0, %p693_p11 }
  0x21   :  { %703 = shalt.err (!%p700_p1)
}
  0x22   :  { %s779_s28 = smov 64   ;;  %s780_s29 = smov 4  }
  0x23   :  { %61 = dma.hbm_to_vmem [thread:$0]  %s952_s4, 1024, %s56_s18, [#allocation8], %s779_s28, %s779_s28, %s780_s29  }
  0x24   :  { %s704_s12 = scalar_lea.hbm %s948_s0, 128 }
  0x25   :  { %p705_p2 = scmp.ne.s32.totalorder %s948_s0, %s704_s12  ;;  %p708_p3 = scmp.lt.u32.totalorder %s704_s12, %s948_s0 }
  0x27   :  { %p710_p4 = pnand %p708_p3, %p705_p2 }
  0x29   :  { %713 = shalt.err (!%p710_p4)
}
  0x2a   :  { %s714_s17 = scalar_lea.vmem %s23_s20, 128  ;;  %p719_p6 = scmp.lt.s32.totalorder %s23_s20, %s23_s20 }
  0x2b   :  { %p715_p5 = scmp.ne.s32.totalorder %s23_s20, %s714_s17  ;;  %p720_p7 = scmp.lt.s32.totalorder %s714_s17, %s714_s17 }
  0x2d   :  { %p721_p8 = por %p720_p7, %p719_p6 }
  0x2f   :  { %p722_p9 = pnand %p721_p8, %p715_p5 }
  0x31   :  { %725 = shalt.err (!%p722_p9)
}
  0x32   :  { %25 = dma.hbm_to_vmem [thread:$0]  %s948_s0, 128, %s23_s20, [#allocation3]  }
  0x33   :  { %s781_s19 = smov [#allocation6]   ;;  %s782_s22 = smov [#allocation9]  }
  0x34   :  { %s41_s21 = sshll.u32 %s781_s19, 4  ;;  %s67_s23 = sshll.u32 %s782_s22, 4  ;;  %s42_s21 = int_to_ptr.vmem [resolvable:$true] %s41_s21  ;;  %s68_s23 = int_to_ptr.vmem [resolvable:$true] %s67_s23 }
  0x35   :  { %s726_s26 = scalar_lea.hbm %s950_s2, 1024 }
  0x36   :  { %p727_p10 = scmp.ne.s32.totalorder %s950_s2, %s726_s26  ;;  %p730_p11 = scmp.lt.u32.totalorder %s726_s26, %s950_s2 }
  0x38   :  { %p732_p12 = pnand %p730_p11, %p727_p10 }
  0x3a   :  { %735 = shalt.err (!%p732_p12)
}
  0x3b   :  { %s736_s0 = scalar_lea.vmem %s42_s21, 1024  ;;  %p741_p0 = scmp.lt.s32.totalorder %s42_s21, %s42_s21 }
  0x3c   :  { %p737_p13 = scmp.ne.s32.totalorder %s42_s21, %s736_s0  ;;  %p742_p1 = scmp.lt.s32.totalorder %s736_s0, %s736_s0 }
  0x3e   :  { %p743_p2 = por %p742_p1, %p741_p0 }
  0x40   :  { %p744_p3 = pnand %p743_p2, %p737_p13 }
  0x42   :  { %747 = shalt.err (!%p744_p3)
}
  0x43   :  { %47 = dma.hbm_to_vmem [thread:$0]  %s950_s2, 1024, %s42_s21, [#allocation5], %s779_s28, %s779_s28, %s780_s29  }
  0x44   :  { %s748_s13 = scalar_lea.hbm %s953_s5, 1024 }
  0x45   :  { %p749_p4 = scmp.ne.s32.totalorder %s953_s5, %s748_s13  ;;  %p752_p5 = scmp.lt.u32.totalorder %s748_s13, %s953_s5 }
  0x47   :  { %p754_p6 = pnand %p752_p5, %p749_p4 }
  0x49   :  { %757 = shalt.err (!%p754_p6)
}
  0x4a   :  { %s758_s4 = scalar_lea.vmem %s68_s23, 1024  ;;  %p763_p8 = scmp.lt.s32.totalorder %s68_s23, %s68_s23 }
  0x4b   :  { %p759_p7 = scmp.ne.s32.totalorder %s68_s23, %s758_s4  ;;  %p764_p9 = scmp.lt.s32.totalorder %s758_s4, %s758_s4 }
  0x4d   :  { %p765_p10 = por %p764_p9, %p763_p8 }
  0x4f   :  { %p766_p11 = pnand %p765_p10, %p759_p7 }
  0x51   :  { %769 = shalt.err (!%p766_p11)
}
  0x52   :  { %73 = dma.hbm_to_vmem [thread:$0]  %s953_s5, 1024, %s68_s23, [#allocation8], %s779_s28, %s779_s28, %s780_s29  }
  0x53   :  { %770 = dma.done.wait [#allocation3], 128  }
  0x54   :  { %771 = vsyncadd [#allocation3], 4294967168 }
  0x55   :  { %772 = dma.done.wait [#allocation5], 1152  }
  0x56   :  { %773 = vsyncadd [#allocation5], 4294966144 }
  0x57   :  { %774 = dma.done.wait [#allocation8], 2048  }
  0x58   :  { %775 = vsyncadd [#allocation8], 4294965248  ;;  %v783_v0 = vmov 0.0   ;;  %vm784_vm0 = vmmov 0   ;;  %v632_v1 = vld [vmem:[#allocation6] sm:$0xff]   ;;  %v633_v2 = vld [vmem:[#allocation6 + $0x8] sm:$0xff]  }
  0x59   :  { %563 = vmatprep.subr.bf16.mxu1 %v783_v0  ;;  %555 = vmatprep.subr.bf16.mxu0 %v783_v0  ;;  %v634_v3 = vld [vmem:[#allocation6 + $0x10] sm:$0xff]   ;;  %v638_v4 = vld [vmem:[%s951_s3] sm:$0xff]   ;;  %v640_v5 = vld [vmem:[%s951_s3 + $0x8] sm:$0xff]   ;;  %vm130_vm1 = vcmask 261120  }
  0x5a   :  { %559 = vmatprep.mubr.msk.bf16.mxu0 %vm784_vm0, %v783_v0  ;;  %579 = vmatprep.mubr.msk.bf16.mxu1 %vm784_vm0, %v783_v0  ;;  %v96_v6 = vld [vmem:[#allocation4] sm:$0xff]  ;;  %v643_v9 = vld [vmem:[#allocation9] sm:$0xff]   ;;  %v645_v11 = vld [vmem:[#allocation9 + $0x8] sm:$0xff]  }
  0x5b   :  { %564 = vmatpush3.bf16.msra.mxu1 %v632_v1  ;;  %556 = vmatpush3.bf16.msra.mxu0 %v638_v4  ;;  %v635_v7 = vld [vmem:[#allocation6 + $0x18] sm:$0xff]   ;;  %v97_v8 = vpack.c.bf16 %v96_v6, %v96_v6  ;;  %v636_v10 = vld [vmem:[#allocation6 + $0x20] sm:$0xff]   ;;  %v637_v12 = vld [vmem:[#allocation6 + $0x28] sm:$0xff]  }
  0x5c   :  { %565 = vmatprep.subr.bf16.mxu1 %v783_v0  ;;  %557 = vmatprep.subr.bf16.mxu0 %v783_v0  ;;  %v647_v13 = vld [vmem:[#allocation9 + $0x10] sm:$0xff]   ;;  %v641_v15 = vld [vmem:[#allocation6 + $0x38] sm:$0xff]   ;;  %v642_v18 = vld [vmem:[#allocation7] sm:$0xff]  }
  0x5d   :  { %v639_v14 = vld [vmem:[#allocation6 + $0x30] sm:$0xff]   ;;  %v644_v19 = vld [vmem:[#allocation7 + $0x8] sm:$0xff]   ;;  %v648_v21 = vld [vmem:[#allocation7 + $0x18] sm:$0xff]  }
  0x5e   :  { %v94_v16 = vld [vmem:[#allocation2] sm:$0xff]  ;;  %v649_v22 = vld [vmem:[#allocation9 + $0x18] sm:$0xff]   ;;  %v650_v23 = vld [vmem:[#allocation7 + $0x20] sm:$0xff]  }
  0x5f   :  { %566 = vmatpush3.bf16.msra.mxu1 %v633_v2  ;;  %558 = vmatpush3.bf16.msra.mxu0 %v640_v5  ;;  %v95_v17 = vpack.c.bf16 %v94_v16, %v94_v16  ;;  %v646_v20 = vld [vmem:[#allocation7 + $0x10] sm:$0xff]   ;;  %v651_v24 = vld [vmem:[#allocation9 + $0x20] sm:$0xff]   ;;  %v652_v25 = vld [vmem:[#allocation7 + $0x28] sm:$0xff]  }
  0x60   :  { %567 = vmatprep.subr.bf16.mxu1 %v783_v0  ;;  %583 = vmatprep.subr.bf16.mxu0 %v783_v0  ;;  %v653_v26 = vld [vmem:[#allocation9 + $0x28] sm:$0xff]   ;;  %v654_v27 = vld [vmem:[#allocation7 + $0x30] sm:$0xff]   ;;  %v656_v29 = vld [vmem:[#allocation7 + $0x38] sm:$0xff]  }
  0x61   :  { %v655_v28 = vld [vmem:[#allocation9 + $0x30] sm:$0xff]   ;;  %v657_v30 = vld [vmem:[#allocation9 + $0x38] sm:$0xff]  }
  0x62   :  { %560 = vmatmul.mubr.msk.bf16.vlgmr.msra.gmra.mrb[0].mxu0 %vm130_vm1, %v97_v8  ;;  %v507_v36 = vld [vmem:[%s954_s6] ss:$0 sm:$0xff] }
  0x63   :  { %568 = vmatpush3.bf16.msra.mxu1 %v634_v3  ;;  %584 = vmatpush3.bf16.msra.mxu0 %v643_v9  ;;  %v524_v49 = vld [vmem:[%s955_s7] ss:$0 sm:$0xff] }
  0x64   :  { %569 = vmatprep.subr.bf16.mxu1 %v783_v0  ;;  %599 = vmatprep.mubr.msk.bf16.mxu0 %vm784_vm0, %v783_v0 }
  0x65   :  { %585 = vmatprep.subr.bf16.mxu0 %v783_v0 }
  0x67   :  { %570 = vmatpush3.bf16.msra.mxu1 %v635_v7  ;;  %586 = vmatpush3.bf16.msra.mxu0 %v645_v11 }
  0x68   :  { %571 = vmatprep.subr.bf16.mxu1 %v783_v0  ;;  %587 = vmatprep.subr.bf16.mxu0 %v783_v0 }
  0x6b   :  { %572 = vmatpush3.bf16.msra.mxu1 %v636_v10  ;;  %588 = vmatpush3.bf16.msra.mxu0 %v647_v13 }
  0x6c   :  { %573 = vmatprep.subr.bf16.mxu1 %v783_v0  ;;  %589 = vmatprep.subr.bf16.mxu0 %v783_v0 }
  0x6f   :  { %574 = vmatpush3.bf16.msra.mxu1 %v637_v12  ;;  %590 = vmatpush3.bf16.msra.mxu0 %v649_v22 }
  0x70   :  { %575 = vmatprep.subr.bf16.mxu1 %v783_v0  ;;  %591 = vmatprep.subr.bf16.mxu0 %v783_v0 }
  0x73   :  { %576 = vmatpush3.bf16.msra.mxu1 %v639_v14  ;;  %592 = vmatpush3.bf16.msra.mxu0 %v651_v24 }
  0x74   :  { %577 = vmatprep.subr.bf16.mxu1 %v783_v0  ;;  %593 = vmatprep.subr.bf16.mxu0 %v783_v0 }
  0x77   :  { %578 = vmatpush3.bf16.msra.mxu1 %v641_v15  ;;  %594 = vmatpush3.bf16.msra.mxu0 %v653_v26 }
  0x78   :  { %603 = vmatprep.subr.bf16.mxu1 %v783_v0  ;;  %595 = vmatprep.subr.bf16.mxu0 %v783_v0 }
  0x7a   :  { %580 = vmatmul.mubr.bf16.vlgmr.msra.gmra.mrb[0].mxu1 %v95_v17 }
  0x7b   :  { %604 = vmatpush3.bf16.msra.mxu1 %v642_v18  ;;  %619 = vmatprep.mubr.msk.bf16.mxu1 %vm784_vm0, %v783_v0 }
  0x7c   :  { %605 = vmatprep.subr.bf16.mxu1 %v783_v0  ;;  %596 = vmatpush3.bf16.msra.mxu0 %v655_v28 }
  0x7d   :  { %597 = vmatprep.subr.bf16.mxu0 %v783_v0 }
  0x7f   :  { %606 = vmatpush3.bf16.msra.mxu1 %v644_v19 }
  0x80   :  { %607 = vmatprep.subr.bf16.mxu1 %v783_v0  ;;  %598 = vmatpush3.bf16.msra.mxu0 %v657_v30 }
  0x83   :  { %608 = vmatpush3.bf16.msra.mxu1 %v646_v20 }
  0x84   :  { %609 = vmatprep.subr.bf16.mxu1 %v783_v0 }
  0x87   :  { %610 = vmatpush3.bf16.msra.mxu1 %v648_v21 }
  0x88   :  { %611 = vmatprep.subr.bf16.mxu1 %v783_v0 }
  0x8b   :  { %612 = vmatpush3.bf16.msra.mxu1 %v650_v23 }
  0x8c   :  { %613 = vmatprep.subr.bf16.mxu1 %v783_v0 }
  0x8f   :  { %614 = vmatpush3.bf16.msra.mxu1 %v652_v25 }
  0x90   :  { %615 = vmatprep.subr.bf16.mxu1 %v783_v0 }
  0x93   :  { %616 = vmatpush3.bf16.msra.mxu1 %v654_v27 }
  0x94   :  { %617 = vmatprep.subr.bf16.mxu1 %v783_v0 }
  0x97   :  { %618 = vmatpush3.bf16.msra.mxu1 %v656_v29 }
  0x9a   :  { %620 = vmatmul.mubr.bf16.vlgmr.msra.gmra.mrb[4].mxu1 %v95_v17 }
 0x135   :  { %v168_v31 = vpop.f32.mrb[0].mxu0 }
 0x136   :  { %v561_v32 = vpop.f32.mrb[1].mxu0 }
 0x137   :  { %v171_v33 = vpop.f32.mrb[2].mxu0 }
 0x138   :  { %v562_v34 = vpop.f32.mrb[3].mxu0 }
 0x14d   :  { %v256_v35 = vpop.f32.mrb[0].mxu1 }
 0x14e   :  { %v257_v37 = vadd.f32 %v256_v35, %v168_v31  ;;  %v581_v38 = vpop.f32.mrb[1].mxu1 }
 0x14f   :  { %v259_v39 = vpop.f32.mrb[2].mxu1 }
 0x150   :  { %v269_v40 = vadd.f32 %v507_v36, %v257_v37  ;;  %v582_v41 = vpop.f32.mrb[3].mxu1 }
 0x152   :  { %658 = vtanh.f32 %v269_v40 }
 0x15c   :  { %v659_v42 = vpop.eup %658 }
 0x15d   :  { %v271_v43 = vpack.c.bf16 %v659_v42, %v659_v42 }
 0x15f   :  { %600 = vmatmul.mubr.bf16.vlgmr.msra.gmra.mrb[4].mxu0 %v271_v43 }
 0x16d   :  { %v474_v44 = vpop.f32.mrb[4].mxu1 }
 0x16e   :  { %v621_v45 = vpop.f32.mrb[5].mxu1 }
 0x16f   :  { %v477_v46 = vpop.f32.mrb[6].mxu1 }
 0x170   :  { %v622_v47 = vpop.f32.mrb[7].mxu1 }
 0x232   :  { %v386_v48 = vpop.f32.mrb[4].mxu0 }
 0x233   :  { %v475_v50 = vadd.f32 %v474_v44, %v386_v48  ;;  %v601_v51 = vpop.f32.mrb[5].mxu0 }
 0x234   :  { %v389_v52 = vpop.f32.mrb[6].mxu0 }
 0x235   :  { %v487_v53 = vadd.f32 %v524_v49, %v475_v50  ;;  %v602_v54 = vpop.f32.mrb[7].mxu0 }
 0x237   :  { %488 = vst [vmem:[%s956_s8] sm:$0xff] %v487_v53 }
 0x238   :  { %493 = vsyncpa [#allocation3], 1 }
 0x239   :  { %494 = vsyncpa [#allocation5], 1 }
 0x23a   :  { %495 = vsyncpa [#allocation8], 1 }

</bundles_post_ra>
